<compile_context>
chip_gen: v7x
topology: tpu7x:2x2x1
jax: 0.10.0
libtpu: 0.0.40
codegen_flags: <defaults>
</compile_context>

<pallas_src>
import functools

import jax
import jax.numpy as jnp
from jax.experimental import pallas as pl
from jax.experimental.pallas import tpu as pltpu


def _encoder_kernel(x_ref, emb_ref, eps_ref,
                    w1x_ref, b1_ref,
                    w2_ref, b2_ref,
                    w3_ref, b3_ref,
                    wh_ref, bh_ref,
                    out_ref):
    f32 = jnp.float32
    bf16 = w1x_ref.dtype
    L = eps_ref.shape[-1]
    W = out_ref.shape[-1]
    TB = out_ref.shape[0]

    # Layer 1: cat(x, emb(c)) @ W1 + b1
    #        == x @ W1x + (E @ W1c)[c] + b1   (embedding rows gathered in wrapper)
    h = jnp.dot(x_ref[...].astype(bf16), w1x_ref[...], preferred_element_type=f32)
    h = h + emb_ref[...].astype(f32) + b1_ref[...]
    h = jnp.maximum(h, 0.0)

    # Layer 2 (bf16 MXU inputs, f32 accumulation + f32 epilogue)
    h = jnp.dot(h.astype(bf16), w2_ref[...], preferred_element_type=f32) + b2_ref[...]
    h = jnp.maximum(h, 0.0)

    # Layer 3
    h = jnp.dot(h.astype(bf16), w3_ref[...], preferred_element_type=f32) + b3_ref[...]
    h = jnp.maximum(h, 0.0)

    # Fused mu/lv head: one (H3, 2L) matmul, then slice.
    head = jnp.dot(h.astype(bf16), wh_ref[...], preferred_element_type=f32) + bh_ref[...]
    mu = head[:, :L]
    lv = head[:, L:2 * L]
    std = jnp.exp(lv * 0.5)
    z = mu + std * eps_ref[...]

    # Lane-dense output slab (W is a multiple of 128): mu || std || z || 0-pad,
    # assembled in-register and written with one full-width, unmasked store.
    pieces = [mu, std, z]
    if W > 3 * L:
        pieces.append(jnp.zeros((TB, W - 3 * L), f32))
    out_ref[...] = jnp.concatenate(pieces, axis=-1)


def _round_up(n, m):
    return ((n + m - 1) // m) * m


@functools.partial(jax.jit, static_argnames=("latent_dim",))
def encoder_forward(x, c, eps, params, *, latent_dim):
    """Encoder forward pass in one batch-blocked Pallas kernel.

    Args:
      x:   (B, C, H, W) float32 image batch (NCHW, like PyTorch).
      c:   (B,) int32 class labels.
      eps: (B, latent_dim) float32 standard-normal noise for rsample.
      params: dict of f32 weights (see init_params).

    Returns:
      (p_loc, p_scale), (mu, std), z
    """
    B = x.shape[0]
    L = latent_dim
    bf16 = jnp.bfloat16

    x_flat = x.reshape(B, -1).astype(jnp.float32)            # torch .flatten(1)
    img_flat = x_flat.shape[1]

    # --- weight preprocessing (once per call under jit) ----------------------
    # Fold the embedding table into the first layer and gather per-example rows:
    #   cat(x, E[c]) @ [W1x; W1c] == x @ W1x + (E @ W1c)[c]
    w1ce = params["emb"] @ params["w1c"]                      # (num_classes, H1)
    emb_rows = w1ce[c].astype(bf16)                           # (B, H1), replaces one_hot matmul
    # Fuse the mu / lv heads.
    whead = jnp.concatenate([params["wmu"], params["wlv"]], axis=1).astype(bf16)  # (H3, 2L)
    bhead = jnp.concatenate([params["bmu"], params["blv"]], axis=1)               # (1, 2L) f32

    w1x = params["w1x"].astype(bf16)
    w2 = params["w2"].astype(bf16)
    w3 = params["w3"].astype(bf16)
    b1, b2, b3 = params["b1"], params["b2"], params["b3"]     # stay f32

    H1 = w1x.shape[1]
    H2 = w2.shape[1]
    H3 = w3.shape[1]
    Wout = _round_up(3 * L, 128)                              # lane-dense output width

    # --- batch tiling ---------------------------------------------------------
    # >=2 blocks whenever the batch allows it (megacore / v7x TC sharding of the
    # "parallel" batch axis), tiles up to 512 rows to fill the MXU and amortize
    # per-grid-step overhead; ragged tails are padded by <8 rows per block.
    B8 = _round_up(B, 8)
    if B8 <= 64:
        nblk = 1
    else:
        nblk = max(2, -(-B8 // 512))
    TB = _round_up(-(-B8 // nblk), 8)
    Bp = nblk * TB
    pad = Bp - B

    eps_f = eps.astype(jnp.float32)
    if pad:
        x_flat = jnp.pad(x_flat, ((0, pad), (0, 0)))
        emb_rows = jnp.pad(emb_rows, ((0, pad), (0, 0)))
        eps_f = jnp.pad(eps_f, ((0, pad), (0, 0)))

    grid = (nblk,)

    def batch_map(i):
        return (i, 0)

    def bcast_map(i):
        return (0, 0)

    # NOTE: the weight/bias specs are grid-invariant, so Mosaic never re-DMAs
    # them across batch blocks. (pipeline_mode=pl.Buffered(1) would also drop
    # their second VMEM buffer, but total VMEM here is only a few MiB, far under
    # every generation's limit, so the default is kept.)
    in_specs = [
        pl.BlockSpec((TB, img_flat), batch_map),              # x (f32, cast in kernel)
        pl.BlockSpec((TB, H1), batch_map),                    # gathered emb rows (bf16)
        pl.BlockSpec((TB, L), batch_map),                     # eps (f32)
        pl.BlockSpec((img_flat, H1), bcast_map),              # w1x
        pl.BlockSpec((1, H1), bcast_map),                     # b1
        pl.BlockSpec((H1, H2), bcast_map),                    # w2
        pl.BlockSpec((1, H2), bcast_map),                     # b2
        pl.BlockSpec((H2, H3), bcast_map),                    # w3
        pl.BlockSpec((1, H3), bcast_map),                     # b3
        pl.BlockSpec((H3, 2 * L), bcast_map),                 # whead (fused mu|lv)
        pl.BlockSpec((1, 2 * L), bcast_map),                  # bhead
    ]
    out_specs = pl.BlockSpec((TB, Wout), batch_map)

    flops = 2 * Bp * (img_flat * H1 + H1 * H2 + H2 * H3 + H3 * 2 * L)
    bytes_accessed = (
        4 * x_flat.size + 2 * emb_rows.size + 4 * eps_f.size
        + 2 * (w1x.size + w2.size + w3.size + whead.size)
        + 4 * (H1 + H2 + H3 + 2 * L)
        + 4 * Bp * Wout
    )
    cost = pl.CostEstimate(flops=flops,
                           transcendentals=Bp * L,
                           bytes_accessed=bytes_accessed)

    out = pl.pallas_call(
        _encoder_kernel,
        out_shape=jax.ShapeDtypeStruct((Bp, Wout), jnp.float32),
        grid_spec=pltpu.PrefetchScalarGridSpec(
            num_scalar_prefetch=0,
            grid=grid,
            in_specs=in_specs,
            out_specs=out_specs,
        ),
        compiler_params=pltpu.CompilerParams(
            dimension_semantics=("parallel",)),
        cost_estimate=cost,
    )(x_flat, emb_rows, eps_f,
      w1x, b1, w2, b2, w3, b3, whead, bhead)

    mu = out[:B, :L]
    std = out[:B, L:2 * L]
    z = out[:B, 2 * L:3 * L]

    p_loc = jnp.zeros_like(mu)
    p_scale = jnp.ones_like(std)
    return (p_loc, p_scale), (mu, std), z


def init_params(key, img_dim, num_classes, latent_dim):
    """Deterministic synthetic parameters matching the PyTorch module shapes.

    Linear weights are stored transposed (in_features, out_features); the first
    Linear's weight is split into the image part (w1x) and the embedding part
    (w1c) so that cat(x, emb) @ W1 == x @ w1x + emb @ w1c.  Biases are (1, out).
    """
    img_flat = img_dim[0] * img_dim[1] * img_dim[2]
    keys = jax.random.split(key, 12)

    def w(k, shape, fan_in):
        return jax.random.normal(k, shape, jnp.float32) / jnp.sqrt(fan_in)

    return {
        "emb": jax.random.normal(keys[0], (num_classes, num_classes), jnp.float32),
        "w1x": w(keys[1], (img_flat, 512), img_flat + num_classes),
        "w1c": w(keys[2], (num_classes, 512), img_flat + num_classes),
        "b1":  jnp.zeros((1, 512), jnp.float32),
        "w2":  w(keys[3], (512, 256), 512),
        "b2":  jnp.zeros((1, 256), jnp.float32),
        "w3":  w(keys[4], (256, 128), 256),
        "b3":  jnp.zeros((1, 128), jnp.float32),
        "wmu": w(keys[5], (128, latent_dim), 128),
        "bmu": jnp.zeros((1, latent_dim), jnp.float32),
        "wlv": w(keys[6], (128, latent_dim), 128),
        "blv": jnp.zeros((1, latent_dim), jnp.float32),
    }


def reference_forward(x, c, eps, params, latent_dim):
    """Pure-JAX f32 reference (mirrors the PyTorch forward, batch_norm=False)."""
    B = x.shape[0]
    x_flat = x.reshape(B, -1)
    emb = params["emb"][c]                                    # nn.Embedding
    h = jnp.concatenate([x_flat, emb], axis=1)
    w1 = jnp.concatenate([params["w1x"], params["w1c"]], axis=0)
    h = jax.nn.relu(h @ w1 + params["b1"])
    h = jax.nn.relu(h @ params["w2"] + params["b2"])
    h = jax.nn.relu(h @ params["w3"] + params["b3"])
    mu = h @ params["wmu"] + params["bmu"]
    lv = h @ params["wlv"] + params["blv"]
    std = jnp.exp(lv / 2)
    z = mu + std * eps
    return mu, std, z


if __name__ == "__main__":
    # Small shapes consistent with the module: img_dim=(1,16,16), 10 classes,
    # latent_dim=16, batch=8.
    img_dim = (1, 16, 16)
    num_classes = 10
    latent_dim = 16
    batch = 8

    key = jax.random.PRNGKey(0)
    k_param, k_x, k_c, k_eps = jax.random.split(key, 4)

    params = init_params(k_param, img_dim, num_classes, latent_dim)
    x = jax.random.normal(k_x, (batch,) + img_dim, jnp.float32)
    c = jax.random.randint(k_c, (batch,), 0, num_classes, jnp.int32)
    eps = jax.random.normal(k_eps, (batch, latent_dim), jnp.float32)

    (p_loc, p_scale), (mu, std), z = encoder_forward(
        x, c, eps, params, latent_dim=latent_dim)
    jax.block_until_ready((p_loc, p_scale, mu, std, z))

    # Sanity-check against the pure-JAX f32 reference (looser tolerance because
    # matmul inputs are bf16; accumulation and epilogue are f32).
    mu_r, std_r, z_r = reference_forward(x, c, eps, params, latent_dim)
    assert jnp.allclose(mu, mu_r, atol=5e-2, rtol=5e-2), "mu mismatch"
    assert jnp.allclose(std, std_r, atol=5e-2, rtol=5e-2), "std mismatch"
    assert jnp.allclose(z, z_r, atol=5e-2, rtol=5e-2), "z mismatch"
    assert p_loc.shape == (batch, latent_dim) and p_scale.shape == (batch, latent_dim)

    print("KERNEL_OK")
</pallas_src>

<mosaic_0001>
module attributes {stable_mosaic.version = 11 : i64} {
  func.func @_encoder_kernel(%arg0: i32, %arg1: memref<8x256xf32, #tpu.memory_space<vmem>>, %arg2: memref<8x512xbf16, #tpu.memory_space<vmem>>, %arg3: memref<8x16xf32, #tpu.memory_space<vmem>>, %arg4: memref<256x512xbf16, #tpu.memory_space<vmem>>, %arg5: memref<1x512xf32, #tpu.memory_space<vmem>>, %arg6: memref<512x256xbf16, #tpu.memory_space<vmem>>, %arg7: memref<1x256xf32, #tpu.memory_space<vmem>>, %arg8: memref<256x128xbf16, #tpu.memory_space<vmem>>, %arg9: memref<1x128xf32, #tpu.memory_space<vmem>>, %arg10: memref<128x32xbf16, #tpu.memory_space<vmem>>, %arg11: memref<1x32xf32, #tpu.memory_space<vmem>>, %arg12: memref<8x128xf32, #tpu.memory_space<vmem>>) attributes {dimension_semantics = [#tpu.dimension_semantics<parallel>], iteration_bounds = array<i64: 1>, scalar_prefetch = 0 : i64, scratch_operands = 0 : i64, tpu.core_type = #tpu.core_type<tc>, window_params = [{transform_indices = @transform_0, window_bounds = array<i64: 8, 256>}, {transform_indices = @transform_1, window_bounds = array<i64: 8, 512>}, {transform_indices = @transform_2, window_bounds = array<i64: 8, 16>}, {pipeline_mode = #tpu.pipeline_mode<synchronous>, transform_indices = @transform_3, window_bounds = array<i64: 256, 512>}, {pipeline_mode = #tpu.pipeline_mode<synchronous>, transform_indices = @transform_4, window_bounds = array<i64: 1, 512>}, {pipeline_mode = #tpu.pipeline_mode<synchronous>, transform_indices = @transform_5, window_bounds = array<i64: 512, 256>}, {pipeline_mode = #tpu.pipeline_mode<synchronous>, transform_indices = @transform_6, window_bounds = array<i64: 1, 256>}, {pipeline_mode = #tpu.pipeline_mode<synchronous>, transform_indices = @transform_7, window_bounds = array<i64: 256, 128>}, {pipeline_mode = #tpu.pipeline_mode<synchronous>, transform_indices = @transform_8, window_bounds = array<i64: 1, 128>}, {pipeline_mode = #tpu.pipeline_mode<synchronous>, transform_indices = @transform_9, window_bounds = array<i64: 128, 32>}, {pipeline_mode = #tpu.pipeline_mode<synchronous>, transform_indices = @transform_10, window_bounds = array<i64: 1, 32>}, {transform_indices = @transform_11, window_bounds = array<i64: 8, 128>}]} {
    %c0 = arith.constant 0 : index
    %c0_0 = arith.constant 0 : index
    %0 = vector.load %arg1[%c0, %c0_0] : memref<8x256xf32, #tpu.memory_space<vmem>>, vector<8x256xf32>
    %1 = arith.truncf %0 : vector<8x256xf32> to vector<8x256xbf16>
    %c0_1 = arith.constant 0 : index
    %c0_2 = arith.constant 0 : index
    %2 = vector.load %arg4[%c0_1, %c0_2] : memref<256x512xbf16, #tpu.memory_space<vmem>>, vector<256x512xbf16>
    %cst = arith.constant dense<0.000000e+00> : vector<8x512xf32>
    %3 = tpu.matmul %1, %2, %cst {dimension_numbers = #tpu.dot_dimension_numbers<[1], [0], [0], [1], [0, 0, 1, 1], [], []>} : vector<8x256xbf16>, vector<256x512xbf16>, vector<8x512xf32> -> vector<8x512xf32>
    %c0_3 = arith.constant 0 : index
    %c0_4 = arith.constant 0 : index
    %4 = vector.load %arg2[%c0_3, %c0_4] : memref<8x512xbf16, #tpu.memory_space<vmem>>, vector<8x512xbf16>
    %5 = arith.extf %4 : vector<8x512xbf16> to vector<8x512xf32>
    %6 = arith.addf %3, %5 : vector<8x512xf32>
    %c0_5 = arith.constant 0 : index
    %c0_6 = arith.constant 0 : index
    %7 = vector.load %arg5[%c0_5, %c0_6] : memref<1x512xf32, #tpu.memory_space<vmem>>, vector<1x512xf32>
    %8 = vector.broadcast %7 : vector<1x512xf32> to vector<8x512xf32>
    %9 = arith.addf %6, %8 : vector<8x512xf32>
    %cst_7 = arith.constant 0.000000e+00 : f32
    %10 = vector.broadcast %cst_7 : f32 to vector<8x512xf32>
    %11 = arith.maximumf %9, %10 : vector<8x512xf32>
    %12 = arith.truncf %11 : vector<8x512xf32> to vector<8x512xbf16>
    %c0_8 = arith.constant 0 : index
    %c0_9 = arith.constant 0 : index
    %13 = vector.load %arg6[%c0_8, %c0_9] : memref<512x256xbf16, #tpu.memory_space<vmem>>, vector<512x256xbf16>
    %cst_10 = arith.constant dense<0.000000e+00> : vector<8x256xf32>
    %14 = tpu.matmul %12, %13, %cst_10 {dimension_numbers = #tpu.dot_dimension_numbers<[1], [0], [0], [1], [0, 0, 1, 1], [], []>} : vector<8x512xbf16>, vector<512x256xbf16>, vector<8x256xf32> -> vector<8x256xf32>
    %c0_11 = arith.constant 0 : index
    %c0_12 = arith.constant 0 : index
    %15 = vector.load %arg7[%c0_11, %c0_12] : memref<1x256xf32, #tpu.memory_space<vmem>>, vector<1x256xf32>
    %16 = vector.broadcast %15 : vector<1x256xf32> to vector<8x256xf32>
    %17 = arith.addf %14, %16 : vector<8x256xf32>
    %cst_13 = arith.constant 0.000000e+00 : f32
    %18 = vector.broadcast %cst_13 : f32 to vector<8x256xf32>
    %19 = arith.maximumf %17, %18 : vector<8x256xf32>
    %20 = arith.truncf %19 : vector<8x256xf32> to vector<8x256xbf16>
    %c0_14 = arith.constant 0 : index
    %c0_15 = arith.constant 0 : index
    %21 = vector.load %arg8[%c0_14, %c0_15] : memref<256x128xbf16, #tpu.memory_space<vmem>>, vector<256x128xbf16>
    %cst_16 = arith.constant dense<0.000000e+00> : vector<8x128xf32>
    %22 = tpu.matmul %20, %21, %cst_16 {dimension_numbers = #tpu.dot_dimension_numbers<[1], [0], [0], [1], [0, 0, 1, 1], [], []>} : vector<8x256xbf16>, vector<256x128xbf16>, vector<8x128xf32> -> vector<8x128xf32>
    %c0_17 = arith.constant 0 : index
    %c0_18 = arith.constant 0 : index
    %23 = vector.load %arg9[%c0_17, %c0_18] : memref<1x128xf32, #tpu.memory_space<vmem>>, vector<1x128xf32>
    %24 = vector.broadcast %23 : vector<1x128xf32> to vector<8x128xf32>
    %25 = arith.addf %22, %24 : vector<8x128xf32>
    %cst_19 = arith.constant 0.000000e+00 : f32
    %26 = vector.broadcast %cst_19 : f32 to vector<8x128xf32>
    %27 = arith.maximumf %25, %26 : vector<8x128xf32>
    %28 = arith.truncf %27 : vector<8x128xf32> to vector<8x128xbf16>
    %c0_20 = arith.constant 0 : index
    %c0_21 = arith.constant 0 : index
    %29 = vector.load %arg10[%c0_20, %c0_21] : memref<128x32xbf16, #tpu.memory_space<vmem>>, vector<128x32xbf16>
    %cst_22 = arith.constant dense<0.000000e+00> : vector<8x32xf32>
    %30 = tpu.matmul %28, %29, %cst_22 {dimension_numbers = #tpu.dot_dimension_numbers<[1], [0], [0], [1], [0, 0, 1, 1], [], []>} : vector<8x128xbf16>, vector<128x32xbf16>, vector<8x32xf32> -> vector<8x32xf32>
    %c0_23 = arith.constant 0 : index
    %c0_24 = arith.constant 0 : index
    %31 = vector.load %arg11[%c0_23, %c0_24] : memref<1x32xf32, #tpu.memory_space<vmem>>, vector<1x32xf32>
    %32 = vector.broadcast %31 : vector<1x32xf32> to vector<8x32xf32>
    %33 = arith.addf %30, %32 : vector<8x32xf32>
    %34 = vector.extract_strided_slice %33 {offsets = [0, 0], sizes = [8, 16], strides = [1, 1]} : vector<8x32xf32> to vector<8x16xf32>
    %35 = vector.extract_strided_slice %33 {offsets = [0, 16], sizes = [8, 16], strides = [1, 1]} : vector<8x32xf32> to vector<8x16xf32>
    %cst_25 = arith.constant 5.000000e-01 : f32
    %36 = vector.broadcast %cst_25 : f32 to vector<8x16xf32>
    %37 = arith.mulf %35, %36 : vector<8x16xf32>
    %38 = math.exp %37 : vector<8x16xf32>
    %c0_26 = arith.constant 0 : index
    %c0_27 = arith.constant 0 : index
    %39 = vector.load %arg3[%c0_26, %c0_27] : memref<8x16xf32, #tpu.memory_space<vmem>>, vector<8x16xf32>
    %40 = arith.mulf %38, %39 : vector<8x16xf32>
    %41 = arith.addf %34, %40 : vector<8x16xf32>
    %cst_28 = arith.constant 0.000000e+00 : f32
    %42 = vector.broadcast %cst_28 : f32 to vector<8x80xf32>
    %43 = tpu.concatenate %34, %38, %41, %42 in 1 : vector<8x16xf32>, vector<8x16xf32>, vector<8x16xf32>, vector<8x80xf32> -> vector<8x128xf32>
    %c0_29 = arith.constant 0 : index
    %c0_30 = arith.constant 0 : index
    %44 = vector.load %arg12[%c0_29, %c0_30] : memref<8x128xf32, #tpu.memory_space<vmem>>, vector<8x128xf32>
    tpu.vector_store %arg12[%c0_29, %c0_30], %43 {strides = array<i32>} : memref<8x128xf32, #tpu.memory_space<vmem>>, vector<8x128xf32>,
    return
  }
  func.func @transform_0(%arg0: i32) -> (i32, i32) {
    %c0_i32 = arith.constant 0 : i32
    %c0_i32_0 = arith.constant 0 : i32
    return %arg0, %c0_i32 : i32, i32
  }
  func.func @transform_1(%arg0: i32) -> (i32, i32) {
    %c0_i32 = arith.constant 0 : i32
    %c0_i32_0 = arith.constant 0 : i32
    return %arg0, %c0_i32 : i32, i32
  }
  func.func @transform_2(%arg0: i32) -> (i32, i32) {
    %c0_i32 = arith.constant 0 : i32
    %c0_i32_0 = arith.constant 0 : i32
    return %arg0, %c0_i32 : i32, i32
  }
  func.func @transform_3(%arg0: i32) -> (i32, i32) {
    %c0_i32 = arith.constant 0 : i32
    %c0_i32_0 = arith.constant 0 : i32
    %c0_i32_1 = arith.constant 0 : i32
    return %c0_i32, %c0_i32_0 : i32, i32
  }
  func.func @transform_4(%arg0: i32) -> (i32, i32) {
    %c0_i32 = arith.constant 0 : i32
    %c0_i32_0 = arith.constant 0 : i32
    %c0_i32_1 = arith.constant 0 : i32
    return %c0_i32, %c0_i32_0 : i32, i32
  }
  func.func @transform_5(%arg0: i32) -> (i32, i32) {
    %c0_i32 = arith.constant 0 : i32
    %c0_i32_0 = arith.constant 0 : i32
    %c0_i32_1 = arith.constant 0 : i32
    return %c0_i32, %c0_i32_0 : i32, i32
  }
  func.func @transform_6(%arg0: i32) -> (i32, i32) {
    %c0_i32 = arith.constant 0 : i32
    %c0_i32_0 = arith.constant 0 : i32
    %c0_i32_1 = arith.constant 0 : i32
    return %c0_i32, %c0_i32_0 : i32, i32
  }
  func.func @transform_7(%arg0: i32) -> (i32, i32) {
    %c0_i32 = arith.constant 0 : i32
    %c0_i32_0 = arith.constant 0 : i32
    %c0_i32_1 = arith.constant 0 : i32
    return %c0_i32, %c0_i32_0 : i32, i32
  }
  func.func @transform_8(%arg0: i32) -> (i32, i32) {
    %c0_i32 = arith.constant 0 : i32
    %c0_i32_0 = arith.constant 0 : i32
    %c0_i32_1 = arith.constant 0 : i32
    return %c0_i32, %c0_i32_0 : i32, i32
  }
  func.func @transform_9(%arg0: i32) -> (i32, i32) {
    %c0_i32 = arith.constant 0 : i32
    %c0_i32_0 = arith.constant 0 : i32
    %c0_i32_1 = arith.constant 0 : i32
    return %c0_i32, %c0_i32_0 : i32, i32
  }
  func.func @transform_10(%arg0: i32) -> (i32, i32) {
    %c0_i32 = arith.constant 0 : i32
    %c0_i32_0 = arith.constant 0 : i32
    %c0_i32_1 = arith.constant 0 : i32
    return %c0_i32, %c0_i32_0 : i32, i32
  }
  func.func @transform_11(%arg0: i32) -> (i32, i32) {
    %c0_i32 = arith.constant 0 : i32
    %c0_i32_0 = arith.constant 0 : i32
    return %arg0, %c0_i32 : i32, i32
  }
}

</mosaic_0001>

<bundles_post_ra>
// kernel: encoder_forward.1
= control target key start
LH: loop header
LB: loop body
LE: loop exit
PB: predicated region body
PF: predicated region fallthrough
CT: control target
= control target key end

     0   :  { %vm1783_vm0 = vmmov 0   ;;  %vm1337_vm1 = vcmask 130048   ;;  %vm1339_vm2 = vcmask 261120   ;;  %vm1341_vm3 = vcmask 392192   ;;  %s2356_s3 = inlined_call_operand.vmem [shape: bf16[256,512], index: 3, kind: input, shape index: {}]   ;;  %s2357_s0 = inlined_call_operand.vmem [shape: f32[8,256], index: 0, kind: input, shape index: {}]   ;;  %s2358_s5 = inlined_call_operand.vmem [shape: bf16[512,256], index: 5, kind: input, shape index: {}]   ;;  %s2359_s4 = inlined_call_operand.vmem [shape: f32[1,512], index: 4, kind: input, shape index: {}]   ;;  %s2360_s7 = inlined_call_operand.vmem [shape: bf16[256,128], index: 7, kind: input, shape index: {}]   ;;  %s2361_s1 = inlined_call_operand.vmem [shape: bf16[8,512], index: 1, kind: input, shape index: {}]   ;;  %s2362_s9 = inlined_call_operand.vmem [shape: bf16[128,32], index: 9, kind: input, shape index: {}]   ;;  %s2363_s6 = inlined_call_operand.vmem [shape: f32[1,256], index: 6, kind: input, shape index: {}]   ;;  %s2364_s2 = inlined_call_operand.vmem [shape: f32[8,16], index: 2, kind: input, shape index: {}]   ;;  %s2365_s8 = inlined_call_operand.vmem [shape: f32[1,128], index: 8, kind: input, shape index: {}]   ;;  %s2366_s10 = inlined_call_operand.vmem [shape: f32[1,32], index: 10, kind: input, shape index: {}]   ;;  %s2367_s11 = inlined_call_operand.vmem [shape: f32[8,128], index: 11, kind: output, shape index: {}]  }
   0x1   :  { %v1564_v0 = vld [vmem:[%s2356_s3 + $0x4] ss:$16 sps:$4 sm:$0xff]   ;;  %v1566_v1 = vld [vmem:[%s2356_s3] ss:$16 sps:$4 sm:$0xff]   ;;  %v1611_v13 = vld [vmem:[%s2356_s3 + $0xc] ss:$16 sps:$4 sm:$0xff]  }
   0x2   :  { %433 = vmatprep.subr.bf16.mxu0 %v1564_v0  ;;  %v1567_v2 = vld [vmem:[%s2356_s3 + $0x24] ss:$16 sps:$4 sm:$0xff]   ;;  %v1569_v3 = vld [vmem:[%s2356_s3 + $0x20] ss:$16 sps:$4 sm:$0xff]   ;;  %v1614_v16 = vld [vmem:[%s2356_s3 + $0x8] ss:$16 sps:$4 sm:$0xff]   ;;  %474 = vmatprep.subr.bf16.mxu1 %v1611_v13 }
   0x3   :  { %434 = vmatpush1.bf16.msra.mxu0 %v1566_v1  ;;  %v1570_v4 = vld [vmem:[%s2356_s3 + $0x44] ss:$16 sps:$4 sm:$0xff]   ;;  %v1572_v5 = vld [vmem:[%s2356_s3 + $0x40] ss:$16 sps:$4 sm:$0xff]   ;;  %v40_v17 = vld [vmem:[%s2357_s0 + $0x8] sm:$0xff]  ;;  %475 = vmatpush1.bf16.msra.mxu1 %v1614_v16 }
   0x4   :  { %435 = vmatprep.subr.bf16.mxu0 %v1567_v2  ;;  %v1573_v6 = vld [vmem:[%s2356_s3 + $0x64] ss:$16 sps:$4 sm:$0xff]   ;;  %v1575_v7 = vld [vmem:[%s2356_s3 + $0x60] ss:$16 sps:$4 sm:$0xff]   ;;  %v42_v18 = vpack.c.bf16 %v40_v17, %v40_v17  ;;  %v1615_v19 = vld [vmem:[%s2356_s3 + $0x2c] ss:$16 sps:$4 sm:$0xff]  }
   0x5   :  { %v1576_v8 = vld [vmem:[%s2356_s3 + $0x84] ss:$16 sps:$4 sm:$0xff]   ;;  %v1578_v9 = vld [vmem:[%s2356_s3 + $0x80] ss:$16 sps:$4 sm:$0xff]   ;;  %v1617_v20 = vld [vmem:[%s2356_s3 + $0x28] ss:$16 sps:$4 sm:$0xff]   ;;  %476 = vmatprep.subr.bf16.mxu1 %v1615_v19 }
   0x6   :  { %v1579_v10 = vld [vmem:[%s2356_s3 + $0xa4] ss:$16 sps:$4 sm:$0xff]   ;;  %v1581_v11 = vld [vmem:[%s2356_s3 + $0xa0] ss:$16 sps:$4 sm:$0xff]   ;;  %v1618_v21 = vld [vmem:[%s2356_s3 + $0x4c] ss:$16 sps:$4 sm:$0xff]   ;;  %465 = vmatprep.mubr.bf16.mxu0 %v42_v18  ;;  %506 = vmatprep.mubr.bf16.mxu1 %v42_v18 }
   0x7   :  { %436 = vmatpush1.bf16.msra.mxu0 %v1569_v3  ;;  %v1582_v12 = vld [vmem:[%s2356_s3 + $0xc4] ss:$16 sps:$4 sm:$0xff]   ;;  %v1584_v14 = vld [vmem:[%s2356_s3 + $0xc0] ss:$16 sps:$4 sm:$0xff]   ;;  %477 = vmatpush1.bf16.msra.mxu1 %v1617_v20  ;;  %v1620_v24 = vld [vmem:[%s2356_s3 + $0x48] ss:$16 sps:$4 sm:$0xff]  }
   0x8   :  { %437 = vmatprep.subr.bf16.mxu0 %v1570_v4  ;;  %v1585_v15 = vld [vmem:[%s2356_s3 + $0xe4] ss:$16 sps:$4 sm:$0xff]   ;;  %v1587_v22 = vld [vmem:[%s2356_s3 + $0xe0] ss:$16 sps:$4 sm:$0xff]   ;;  %478 = vmatprep.subr.bf16.mxu1 %v1618_v21  ;;  %v1621_v25 = vld [vmem:[%s2356_s3 + $0x6c] ss:$16 sps:$4 sm:$0xff]  }
   0x9   :  { %v1588_v23 = vld [vmem:[%s2356_s3 + $0x104] ss:$16 sps:$4 sm:$0xff]   ;;  %v1590_v26 = vld [vmem:[%s2356_s3 + $0x100] ss:$16 sps:$4 sm:$0xff]   ;;  %v1623_v28 = vld [vmem:[%s2356_s3 + $0x68] ss:$16 sps:$4 sm:$0xff]  }
   0xa   :  { %v1591_v27 = vld [vmem:[%s2356_s3 + $0x124] ss:$16 sps:$4 sm:$0xff]   ;;  %v1624_v29 = vld [vmem:[%s2356_s3 + $0x8c] ss:$16 sps:$4 sm:$0xff]   ;;  %v1593_v30 = vld [vmem:[%s2356_s3 + $0x120] ss:$16 sps:$4 sm:$0xff]  }
   0xb   :  { %438 = vmatpush1.bf16.msra.mxu0 %v1572_v5  ;;  %479 = vmatpush1.bf16.msra.mxu1 %v1620_v24  ;;  %v1594_v31 = vld [vmem:[%s2356_s3 + $0x144] ss:$16 sps:$4 sm:$0xff]   ;;  %v1626_v32 = vld [vmem:[%s2356_s3 + $0x88] ss:$16 sps:$4 sm:$0xff]   ;;  %v1627_v33 = vld [vmem:[%s2356_s3 + $0xac] ss:$16 sps:$4 sm:$0xff]  }
   0xc   :  { %439 = vmatprep.subr.bf16.mxu0 %v1573_v6  ;;  %480 = vmatprep.subr.bf16.mxu1 %v1621_v25  ;;  %v1596_v34 = vld [vmem:[%s2356_s3 + $0x140] ss:$16 sps:$4 sm:$0xff]   ;;  %v1597_v35 = vld [vmem:[%s2356_s3 + $0x164] ss:$16 sps:$4 sm:$0xff]   ;;  %v1629_v36 = vld [vmem:[%s2356_s3 + $0xa8] ss:$16 sps:$4 sm:$0xff]  }
   0xd   :  { %v1630_v37 = vld [vmem:[%s2356_s3 + $0xcc] ss:$16 sps:$4 sm:$0xff]   ;;  %v1599_v38 = vld [vmem:[%s2356_s3 + $0x160] ss:$16 sps:$4 sm:$0xff]   ;;  %v1600_v39 = vld [vmem:[%s2356_s3 + $0x184] ss:$16 sps:$4 sm:$0xff]  }
   0xe   :  { %v1632_v40 = vld [vmem:[%s2356_s3 + $0xc8] ss:$16 sps:$4 sm:$0xff]   ;;  %v1633_v41 = vld [vmem:[%s2356_s3 + $0xec] ss:$16 sps:$4 sm:$0xff]   ;;  %v1602_v42 = vld [vmem:[%s2356_s3 + $0x180] ss:$16 sps:$4 sm:$0xff]  }
   0xf   :  { %440 = vmatpush1.bf16.msra.mxu0 %v1575_v7  ;;  %481 = vmatpush1.bf16.msra.mxu1 %v1623_v28  ;;  %v1603_v43 = vld [vmem:[%s2356_s3 + $0x1a4] ss:$16 sps:$4 sm:$0xff]   ;;  %v1635_v44 = vld [vmem:[%s2356_s3 + $0xe8] ss:$16 sps:$4 sm:$0xff]   ;;  %v1636_v45 = vld [vmem:[%s2356_s3 + $0x10c] ss:$16 sps:$4 sm:$0xff]  }
  0x10   :  { %441 = vmatprep.subr.bf16.mxu0 %v1576_v8  ;;  %482 = vmatprep.subr.bf16.mxu1 %v1624_v29  ;;  %v1605_v46 = vld [vmem:[%s2356_s3 + $0x1a0] ss:$16 sps:$4 sm:$0xff]   ;;  %v1606_v47 = vld [vmem:[%s2356_s3 + $0x1c4] ss:$16 sps:$4 sm:$0xff]   ;;  %v1638_v48 = vld [vmem:[%s2356_s3 + $0x108] ss:$16 sps:$4 sm:$0xff]  }
  0x11   :  { %v1639_v49 = vld [vmem:[%s2356_s3 + $0x12c] ss:$16 sps:$4 sm:$0xff]   ;;  %v1608_v50 = vld [vmem:[%s2356_s3 + $0x1c0] ss:$16 sps:$4 sm:$0xff]   ;;  %v1609_v51 = vld [vmem:[%s2356_s3 + $0x1e4] ss:$16 sps:$4 sm:$0xff]  }
  0x12   :  { %v1641_v52 = vld [vmem:[%s2356_s3 + $0x128] ss:$16 sps:$4 sm:$0xff]   ;;  %v1642_v53 = vld [vmem:[%s2356_s3 + $0x14c] ss:$16 sps:$4 sm:$0xff]   ;;  %v1613_v54 = vld [vmem:[%s2356_s3 + $0x1e0] ss:$16 sps:$4 sm:$0xff]  }
  0x13   :  { %442 = vmatpush1.bf16.msra.mxu0 %v1578_v9  ;;  %483 = vmatpush1.bf16.msra.mxu1 %v1626_v32  ;;  %v39_v55 = vld [vmem:[%s2357_s0] sm:$0xff]  ;;  %v1644_v56 = vld [vmem:[%s2356_s3 + $0x148] ss:$16 sps:$4 sm:$0xff]   ;;  %v1645_v58 = vld [vmem:[%s2356_s3 + $0x16c] ss:$16 sps:$4 sm:$0xff]   ;;  %s1784_s0 = smov 16  }
  0x14   :  { %443 = vmatprep.subr.bf16.mxu0 %v1579_v10  ;;  %484 = vmatprep.subr.bf16.mxu1 %v1627_v33  ;;  %v1662_v57 = vld [vmem:[%s2358_s5 + $0x4] ss:$8 sps:$4 sm:$0xff]   ;;  %v1660_v59 = vld [vmem:[%s2358_s5] ss:$8 sps:$4 sm:$0xff]   ;;  %v41_v60 = vpack.c.bf16 %v39_v55, %v39_v55  ;;  %v1665_v62 = vld [vmem:[%s2358_s5 + $0x14] ss:$8 sps:$4 sm:$0xff]  }
  0x15   :  { %v1647_v61 = vld [vmem:[%s2356_s3 + $0x168] ss:$16 sps:$4 sm:$0xff]   ;;  %v1648_v63 = vld [vmem:[%s2356_s3 + $0x18c] ss:$16 sps:$4 sm:$0xff]  }
  0x16   :  { %v1663_v0 = vld [vmem:[%s2358_s5 + $0x10] ss:$8 sps:$4 sm:$0xff]   ;;  %v1668_v2 = vld [vmem:[%s2358_s5 + $0x24] ss:$8 sps:$4 sm:$0xff]   ;;  %v1666_v4 = vld [vmem:[%s2358_s5 + $0x20] ss:$8 sps:$4 sm:$0xff]  }
  0x17   :  { %444 = vmatpush1.bf16.msra.mxu0 %v1581_v11  ;;  %485 = vmatpush1.bf16.msra.mxu1 %v1629_v36  ;;  %v1650_v1 = vld [vmem:[%s2356_s3 + $0x188] ss:$16 sps:$4 sm:$0xff]   ;;  %v1651_v3 = vld [vmem:[%s2356_s3 + $0x1ac] ss:$16 sps:$4 sm:$0xff]  }
  0x18   :  { %445 = vmatprep.subr.bf16.mxu0 %v1582_v12  ;;  %486 = vmatprep.subr.bf16.mxu1 %v1630_v37  ;;  %v1653_v5 = vld [vmem:[%s2356_s3 + $0x1a8] ss:$16 sps:$4 sm:$0xff]   ;;  %v1671_v6 = vld [vmem:[%s2358_s5 + $0x34] ss:$8 sps:$4 sm:$0xff]   ;;  %v1674_v10 = vld [vmem:[%s2358_s5 + $0x44] ss:$8 sps:$4 sm:$0xff]   ;;  %v517_v37 = vlaneseq }
  0x19   :  { %v1654_v7 = vld [vmem:[%s2356_s3 + $0x1cc] ss:$16 sps:$4 sm:$0xff]   ;;  %v1669_v8 = vld [vmem:[%s2358_s5 + $0x30] ss:$8 sps:$4 sm:$0xff]   ;;  %v1672_v12 = vld [vmem:[%s2358_s5 + $0x40] ss:$8 sps:$4 sm:$0xff]  }
  0x1a   :  { %v1656_v9 = vld [vmem:[%s2356_s3 + $0x1c8] ss:$16 sps:$4 sm:$0xff]   ;;  %v1657_v11 = vld [vmem:[%s2356_s3 + $0x1ec] ss:$16 sps:$4 sm:$0xff]  }
  0x1b   :  { %446 = vmatpush1.bf16.msra.mxu0 %v1584_v14  ;;  %487 = vmatpush1.bf16.msra.mxu1 %v1632_v40  ;;  %v1659_v13 = vld [vmem:[%s2356_s3 + $0x1e8] ss:$16 sps:$4 sm:$0xff]   ;;  %v1677_v14 = vld [vmem:[%s2358_s5 + $0x54] ss:$8 sps:$4 sm:$0xff]   ;;  %v1680_v16 = vld [vmem:[%s2358_s5 + $0x64] ss:$8 sps:$4 sm:$0xff]  }
  0x1c   :  { %447 = vmatprep.subr.bf16.mxu0 %v1585_v15  ;;  %488 = vmatprep.subr.bf16.mxu1 %v1633_v41  ;;  %v1675_v15 = vld [vmem:[%s2358_s5 + $0x50] ss:$8 sps:$4 sm:$0xff]   ;;  %v1678_v17 = vld [vmem:[%s2358_s5 + $0x60] ss:$8 sps:$4 sm:$0xff]   ;;  %v1683_v18 = vld [vmem:[%s2358_s5 + $0x74] ss:$8 sps:$4 sm:$0xff]  }
  0x1d   :  { %v1681_v19 = vld [vmem:[%s2358_s5 + $0x70] ss:$8 sps:$4 sm:$0xff]   ;;  %v1686_v20 = vld [vmem:[%s2358_s5 + $0x84] ss:$8 sps:$4 sm:$0xff]   ;;  %v1684_v21 = vld [vmem:[%s2358_s5 + $0x80] ss:$8 sps:$4 sm:$0xff]  }
  0x1e   :  { %v1692_v24 = vld [vmem:[%s2358_s5 + $0xa4] ss:$8 sps:$4 sm:$0xff]   ;;  %v1690_v25 = vld [vmem:[%s2358_s5 + $0xa0] ss:$8 sps:$4 sm:$0xff]  }
  0x1f   :  { %448 = vmatpush1.bf16.msra.mxu0 %v1587_v22  ;;  %489 = vmatpush1.bf16.msra.mxu1 %v1635_v44  ;;  %v1689_v22 = vld [vmem:[%s2358_s5 + $0x94] ss:$8 sps:$4 sm:$0xff]   ;;  %v1698_v28 = vld [vmem:[%s2358_s5 + $0xc4] ss:$8 sps:$4 sm:$0xff]   ;;  %v1696_v29 = vld [vmem:[%s2358_s5 + $0xc0] ss:$8 sps:$4 sm:$0xff]  }
  0x20   :  { %449 = vmatprep.subr.bf16.mxu0 %v1588_v23  ;;  %490 = vmatprep.subr.bf16.mxu1 %v1636_v45  ;;  %v1687_v23 = vld [vmem:[%s2358_s5 + $0x90] ss:$8 sps:$4 sm:$0xff]   ;;  %v1704_v32 = vld [vmem:[%s2358_s5 + $0xe4] ss:$8 sps:$4 sm:$0xff]   ;;  %v1702_v33 = vld [vmem:[%s2358_s5 + $0xe0] ss:$8 sps:$4 sm:$0xff]  }
  0x21   :  { %v1710_v36 = vld [vmem:[%s2358_s5 + $0x104] ss:$8 sps:$4 sm:$0xff]   ;;  %v2150_v40 = vld [vmem:[%s2359_s4] sm:$0xf] }
  0x22   :  { %v1758_v44 = vld [vmem:[%s2360_s7 + $0x48] sm:$0xff]  }
  0x23   :  { %450 = vmatpush1.bf16.msra.mxu0 %v1590_v26  ;;  %491 = vmatpush1.bf16.msra.mxu1 %v1638_v48  ;;  %v1695_v26 = vld [vmem:[%s2358_s5 + $0xb4] ss:$8 sps:$4 sm:$0xff]   ;;  %v1759_v45 = vld [vmem:[%s2360_s7 + $0x8] sm:$0xff]  }
  0x24   :  { %451 = vmatprep.subr.bf16.mxu0 %v1591_v27  ;;  %492 = vmatprep.subr.bf16.mxu1 %v1639_v49  ;;  %v1693_v27 = vld [vmem:[%s2358_s5 + $0xb0] ss:$8 sps:$4 sm:$0xff]  }
  0x25   :  { %v1762_v48 = vld [vmem:[%s2360_s7 + $0x58] sm:$0xff]  }
  0x26   :  { %v1763_v49 = vld [vmem:[%s2360_s7 + $0x18] sm:$0xff]  }
  0x27   :  { %452 = vmatpush1.bf16.msra.mxu0 %v1593_v30  ;;  %493 = vmatpush1.bf16.msra.mxu1 %v1641_v52  ;;  %v1701_v30 = vld [vmem:[%s2358_s5 + $0xd4] ss:$8 sps:$4 sm:$0xff]   ;;  %v1766_v52 = vld [vmem:[%s2360_s7 + $0x68] sm:$0xff]  }
  0x28   :  { %453 = vmatprep.subr.bf16.mxu0 %v1594_v31  ;;  %494 = vmatprep.subr.bf16.mxu1 %v1642_v53  ;;  %v1699_v31 = vld [vmem:[%s2358_s5 + $0xd0] ss:$8 sps:$4 sm:$0xff]   ;;  %v1767_v53 = vld [vmem:[%s2360_s7 + $0x28] sm:$0xff]  }
  0x2b   :  { %454 = vmatpush1.bf16.msra.mxu0 %v1596_v34  ;;  %495 = vmatpush1.bf16.msra.mxu1 %v1644_v56  ;;  %v1707_v34 = vld [vmem:[%s2358_s5 + $0xf4] ss:$8 sps:$4 sm:$0xff]  }
  0x2c   :  { %455 = vmatprep.subr.bf16.mxu0 %v1597_v35  ;;  %496 = vmatprep.subr.bf16.mxu1 %v1645_v58  ;;  %v1705_v35 = vld [vmem:[%s2358_s5 + $0xf0] ss:$8 sps:$4 sm:$0xff]  }
  0x2f   :  { %456 = vmatpush1.bf16.msra.mxu0 %v1599_v38  ;;  %497 = vmatpush1.bf16.msra.mxu1 %v1647_v61  ;;  %v2144_v38 = vshrl.u32 %v517_v37, 7  ;;  %v1731_v37 = vld [vmem:[%s2358_s5 + $0x174] ss:$8 sps:$4 sm:$0xff]  }
  0x30   :  { %457 = vmatprep.subr.bf16.mxu0 %v1600_v39  ;;  %498 = vmatprep.subr.bf16.mxu1 %v1648_v63 }
  0x31   :  { %v527_v39 = vsub.s32 2, %v2144_v38  ;;  %v519_v55 = vsub.s32 0, %v2144_v38  ;;  %v523_v56 = vsub.s32 1, %v2144_v38 }
  0x33   :  { %458 = vmatpush1.bf16.msra.mxu0 %v1602_v42  ;;  %499 = vmatpush1.bf16.msra.mxu1 %v1650_v1  ;;  %v2153_v41 = vrot.slane %v2150_v40, %v527_v39  ;;  %v1756_v42 = vld [vmem:[%s2360_s7 + $0x40] sm:$0xff]   ;;  %v524_v61 = vrot.slane %v2150_v40, %v523_v56  ;;  %v1729_v39 = vld [vmem:[%s2358_s5 + $0x170] ss:$8 sps:$4 sm:$0xff]  }
  0x34   :  { %459 = vmatprep.subr.bf16.mxu0 %v1603_v43  ;;  %500 = vmatprep.subr.bf16.mxu1 %v1651_v3  ;;  %v1757_v43 = vld [vmem:[%s2360_s7] sm:$0xff]  }
  0x37   :  { %460 = vmatpush1.bf16.msra.mxu0 %v1605_v46  ;;  %501 = vmatpush1.bf16.msra.mxu1 %v1653_v5  ;;  %v1760_v46 = vld [vmem:[%s2360_s7 + $0x50] sm:$0xff]  }
  0x38   :  { %461 = vmatprep.subr.bf16.mxu0 %v1606_v47  ;;  %502 = vmatprep.subr.bf16.mxu1 %v1654_v7  ;;  %v1761_v47 = vld [vmem:[%s2360_s7 + $0x10] sm:$0xff]  }
  0x3b   :  { %462 = vmatpush1.bf16.msra.mxu0 %v1608_v50  ;;  %503 = vmatpush1.bf16.msra.mxu1 %v1656_v9  ;;  %v1764_v50 = vld [vmem:[%s2360_s7 + $0x60] sm:$0xff]  }
  0x3c   :  { %463 = vmatprep.subr.bf16.mxu0 %v1609_v51  ;;  %504 = vmatprep.subr.bf16.mxu1 %v1657_v11  ;;  %v1765_v51 = vld [vmem:[%s2360_s7 + $0x20] sm:$0xff]   ;;  %v1711_v11 = vld [vmem:[%s2358_s5 + $0x110] ss:$8 sps:$4 sm:$0xff]  }
  0x3f   :  { %464 = vmatpush1.bf16.msra.mxu0 %v1613_v54  ;;  %505 = vmatpush1.bf16.msra.mxu1 %v1659_v13  ;;  %v107_v54 = vld [vmem:[%s2361_s1] sm:$0xff]  ;;  %v108_v13 = vld [vmem:[%s2361_s1 + $0x8] sm:$0xff] }
  0x40   :  { %945 = vmatprep.subr.bf16.mxu0 %v1662_v57  ;;  %1502 = vmatprep.subr.bf16.mxu1 %v1756_v42  ;;  %v109_v57 = vunpack.c.l.bf16 %v107_v54  ;;  %v110_v58 = vunpack.c.h.bf16 %v107_v54  ;;  %v1737_v42 = vld [vmem:[%s2358_s5 + $0x194] ss:$8 sps:$4 sm:$0xff]  }
  0x41   :  { %v1755_v54 = vld [vmem:[%s2358_s5 + $0x1f4] ss:$8 sps:$4 sm:$0xff]  }
  0x42   :  { %466 = vmatmul.mubr.bf16.vlgmr.msra.gmra.mrb[0].mxu0 %v41_v60  ;;  %507 = vmatmul.mubr.bf16.vlgmr.msra.gmra.mrb[0].mxu1 %v41_v60 }
  0x43   :  { %946 = vmatpush1.bf16.msra.mxu0 %v1660_v59  ;;  %1503 = vmatpush3.bf16.msra.mxu1 %v1757_v43  ;;  %v520_v59 = vrot.slane %v2150_v40, %v519_v55  ;;  %v1735_v43 = vld [vmem:[%s2358_s5 + $0x190] ss:$8 sps:$4 sm:$0xff]  }
  0x44   :  { %947 = vmatprep.subr.bf16.mxu0 %v1665_v62  ;;  %1504 = vmatprep.subr.bf16.mxu1 %v1758_v44  ;;  %v1740_v44 = vld [vmem:[%s2358_s5 + $0x1a4] ss:$8 sps:$4 sm:$0xff]  }
  0x47   :  { %948 = vmatpush1.bf16.msra.mxu0 %v1663_v0  ;;  %1505 = vmatpush3.bf16.msra.mxu1 %v1759_v45  ;;  %v1738_v45 = vld [vmem:[%s2358_s5 + $0x1a0] ss:$8 sps:$4 sm:$0xff]  }
  0x48   :  { %949 = vmatprep.subr.bf16.mxu0 %v1668_v2  ;;  %1506 = vmatprep.subr.bf16.mxu1 %v1760_v46  ;;  %v1743_v46 = vld [vmem:[%s2358_s5 + $0x1b4] ss:$8 sps:$4 sm:$0xff]  }
  0x4b   :  { %950 = vmatpush1.bf16.msra.mxu0 %v1666_v4  ;;  %1507 = vmatpush3.bf16.msra.mxu1 %v1761_v47  ;;  %v1741_v47 = vld [vmem:[%s2358_s5 + $0x1b0] ss:$8 sps:$4 sm:$0xff]  }
  0x4c   :  { %951 = vmatprep.subr.bf16.mxu0 %v1671_v6  ;;  %1508 = vmatprep.subr.bf16.mxu1 %v1762_v48  ;;  %v1746_v48 = vld [vmem:[%s2358_s5 + $0x1c4] ss:$8 sps:$4 sm:$0xff]  }
  0x4f   :  { %952 = vmatpush1.bf16.msra.mxu0 %v1669_v8  ;;  %1509 = vmatpush3.bf16.msra.mxu1 %v1763_v49  ;;  %v1708_v8 = vld [vmem:[%s2358_s5 + $0x100] ss:$8 sps:$4 sm:$0xff]  }
  0x50   :  { %953 = vmatprep.subr.bf16.mxu0 %v1674_v10  ;;  %1510 = vmatprep.subr.bf16.mxu1 %v1764_v50  ;;  %v1713_v10 = vld [vmem:[%s2358_s5 + $0x114] ss:$8 sps:$4 sm:$0xff]   ;;  %v1744_v49 = vld [vmem:[%s2358_s5 + $0x1c0] ss:$8 sps:$4 sm:$0xff]  }
  0x51   :  { %v1749_v50 = vld [vmem:[%s2358_s5 + $0x1d4] ss:$8 sps:$4 sm:$0xff]  }
  0x53   :  { %954 = vmatpush1.bf16.msra.mxu0 %v1672_v12  ;;  %1511 = vmatpush3.bf16.msra.mxu1 %v1765_v51  ;;  %v1716_v12 = vld [vmem:[%s2358_s5 + $0x124] ss:$8 sps:$4 sm:$0xff]   ;;  %v1747_v51 = vld [vmem:[%s2358_s5 + $0x1d0] ss:$8 sps:$4 sm:$0xff]  }
  0x54   :  { %955 = vmatprep.subr.bf16.mxu0 %v1677_v14  ;;  %1512 = vmatprep.subr.bf16.mxu1 %v1766_v52  ;;  %v1714_v14 = vld [vmem:[%s2358_s5 + $0x120] ss:$8 sps:$4 sm:$0xff]   ;;  %v1752_v52 = vld [vmem:[%s2358_s5 + $0x1e4] ss:$8 sps:$4 sm:$0xff]  }
  0x57   :  { %956 = vmatpush1.bf16.msra.mxu0 %v1675_v15  ;;  %1513 = vmatpush3.bf16.msra.mxu1 %v1767_v53  ;;  %v1719_v15 = vld [vmem:[%s2358_s5 + $0x134] ss:$8 sps:$4 sm:$0xff]   ;;  %v1750_v53 = vld [vmem:[%s2358_s5 + $0x1e0] ss:$8 sps:$4 sm:$0xff]  }
  0x58   :  { %957 = vmatprep.subr.bf16.mxu0 %v1680_v16  ;;  %v531_v16 = vsub.s32 3, %v2144_v38  ;;  %v1773_v38 = vld [vmem:[%s2362_s9 + $0x8] sm:$0xff]  }
  0x5b   :  { %958 = vmatpush1.bf16.msra.mxu0 %v1678_v17  ;;  %v111_v17 = vunpack.c.l.bf16 %v108_v13 }
  0x5c   :  { %959 = vmatprep.subr.bf16.mxu0 %v1683_v18  ;;  %v112_v18 = vunpack.c.h.bf16 %v108_v13  ;;  %v1772_v13 = vld [vmem:[%s2362_s9] sm:$0xff]  }
  0x5f   :  { %960 = vmatpush1.bf16.msra.mxu0 %v1681_v19  ;;  %v1717_v19 = vld [vmem:[%s2358_s5 + $0x130] ss:$8 sps:$4 sm:$0xff]  }
  0x60   :  { %961 = vmatprep.subr.bf16.mxu0 %v1686_v20  ;;  %v1722_v20 = vld [vmem:[%s2358_s5 + $0x144] ss:$8 sps:$4 sm:$0xff]  }
  0x63   :  { %962 = vmatpush1.bf16.msra.mxu0 %v1684_v21 }
  0x64   :  { %963 = vmatprep.subr.bf16.mxu0 %v1689_v22  ;;  %v532_v22 = vrot.slane %v2150_v40, %v531_v16  ;;  %v1734_v40 = vld [vmem:[%s2358_s5 + $0x184] ss:$8 sps:$4 sm:$0xff]  }
  0x65   :  { %v1777_v16 = vld [vmem:[%s2362_s9 + $0x28] sm:$0xff]  }
  0x67   :  { %964 = vmatpush1.bf16.msra.mxu0 %v1687_v23 }
  0x68   :  { %965 = vmatprep.subr.bf16.mxu0 %v1692_v24 }
  0x6b   :  { %966 = vmatpush1.bf16.msra.mxu0 %v1690_v25 }
  0x6c   :  { %967 = vmatprep.subr.bf16.mxu0 %v1695_v26 }
  0x6f   :  { %968 = vmatpush1.bf16.msra.mxu0 %v1693_v27  ;;  %v1720_v27 = vld [vmem:[%s2358_s5 + $0x140] ss:$8 sps:$4 sm:$0xff]  }
  0x70   :  { %969 = vmatprep.subr.bf16.mxu0 %v1698_v28 }
  0x73   :  { %970 = vmatpush1.bf16.msra.mxu0 %v1696_v29 }
  0x74   :  { %971 = vmatprep.subr.bf16.mxu0 %v1701_v30  ;;  %v1725_v30 = vld [vmem:[%s2358_s5 + $0x154] ss:$8 sps:$4 sm:$0xff]  }
  0x77   :  { %972 = vmatpush1.bf16.msra.mxu0 %v1699_v31 }
  0x78   :  { %973 = vmatprep.subr.bf16.mxu0 %v1704_v32 }
  0x7b   :  { %974 = vmatpush1.bf16.msra.mxu0 %v1702_v33  ;;  %v1723_v33 = vld [vmem:[%s2358_s5 + $0x150] ss:$8 sps:$4 sm:$0xff]  }
  0x7c   :  { %975 = vmatprep.subr.bf16.mxu0 %v1707_v34  ;;  %v1728_v34 = vld [vmem:[%s2358_s5 + $0x164] ss:$8 sps:$4 sm:$0xff]  }
  0x7f   :  { %976 = vmatpush1.bf16.msra.mxu0 %v1705_v35 }
  0x80   :  { %986 = vmatprep.subr.bf16.mxu0 %v1710_v36  ;;  %v1726_v36 = vld [vmem:[%s2358_s5 + $0x160] ss:$8 sps:$4 sm:$0xff]  }
 0x115   :  { %v467_v60 = vpop.f32.mrb[0].mxu0  ;;  %v508_v21 = vpop.f32.mrb[0].mxu1 }
 0x116   :  { %v468_v62 = vadd.f32 %v467_v60, %v109_v57  ;;  %v469_v63 = vpop.f32.mrb[1].mxu0  ;;  %v509_v23 = vadd.f32 %v508_v21, %v111_v17  ;;  %v510_v24 = vpop.f32.mrb[1].mxu1  ;;  %v1753_v57 = vld [vmem:[%s2358_s5 + $0x1f0] ss:$8 sps:$4 sm:$0xff]   ;;  %v1476_v21 = vld [vmem:[%s2365_s8] ss:$0 sm:$0xff] }
 0x117   :  { %v470_v0 = vadd.f32 %v469_v63, %v110_v58  ;;  %v471_v1 = vpop.f32.mrb[2].mxu0  ;;  %v511_v25 = vadd.f32 %v510_v24, %v112_v18  ;;  %v512_v26 = vpop.f32.mrb[2].mxu1  ;;  %v1768_v60 = vld [vmem:[%s2360_s7 + $0x70] sm:$0xff]   ;;  %v1771_v63 = vld [vmem:[%s2360_s7 + $0x38] sm:$0xff]   ;;  %s1786_s8 = smov 32  }
 0x118   :  { %v537_v2 = vadd.f32 %v520_v59, %v468_v62  ;;  %v472_v3 = vpop.f32.mrb[3].mxu0  ;;  %v539_v28 = vadd.f32 %v2153_v41, %v509_v23  ;;  %v513_v29 = vpop.f32.mrb[3].mxu1  ;;  %v1732_v41 = vld [vmem:[%s2358_s5 + $0x180] ss:$8 sps:$4 sm:$0xff]   ;;  %1514 = vmatprep.subr.bf16.mxu1 %v1768_v60  ;;  %v1770_v62 = vld [vmem:[%s2360_s7 + $0x78] sm:$0xff]   ;;  %v1778_v17 = vld [vmem:[%s2362_s9 + $0x30] sm:$0xff]  }
 0x119   :  { %v538_v4 = vadd.f32 %v524_v61, %v470_v0  ;;  %v540_v31 = vadd.f32 %v532_v22, %v511_v25  ;;  %v1769_v61 = vld [vmem:[%s2360_s7 + $0x30] sm:$0xff]   ;;  %v1782_v0 = vmov 0.0   ;;  %v613_v1 = vld [vmem:[%s2363_s6] sm:$0x3]  ;;  %v1779_v18 = vld [vmem:[%s2362_s9 + $0x38] sm:$0xff]  }
 0x11a   :  { %v541_v5 = vmax.f32 %v537_v2, 0.0  ;;  %v543_v58 = vmax.f32 %v539_v28, 0.0  ;;  %1515 = vmatpush3.bf16.msra.mxu1 %v1769_v61  ;;  %v618_v2 = vrot.slane %v613_v1, %v519_v55  ;;  %v622_v3 = vrot.slane %v613_v1, %v523_v56  ;;  %v1774_v55 = vld [vmem:[%s2362_s9 + $0x10] sm:$0xff]   ;;  %v1775_v56 = vld [vmem:[%s2362_s9 + $0x18] sm:$0xff]   ;;  %v1493_v29 = vld [vmem:[%s2366_s10] ss:$0 sm:$0xff] }
 0x11b   :  { %v542_v6 = vmax.f32 %v538_v4, 0.0  ;;  %v544_v32 = vmax.f32 %v540_v31, 0.0  ;;  %1516 = vmatprep.subr.bf16.mxu1 %v1770_v62 }
 0x11c   :  { %v545_v9 = vpack.c.bf16 %v541_v5, %v541_v5  ;;  %v547_v59 = vpack.c.bf16 %v543_v58, %v543_v58 }
 0x11d   :  { %v546_v7 = vpack.c.bf16 %v542_v6, %v542_v6  ;;  %v548_v35 = vpack.c.bf16 %v544_v32, %v544_v32 }
 0x11e   :  { %1517 = vmatpush3.bf16.msra.mxu1 %v1771_v63 }
 0x11f   :  { %977 = vmatprep.mubr.bf16.mxu0 %v546_v7  ;;  %1533 = vmatprep.subr.bf16.mxu1 %v1782_v0 }
 0x120   :  { %978 = vmatmul.mubr.bf16.vlgmr.msra.gmra.mrb[4].mxu0 %v545_v9 }
 0x121   :  { %987 = vmatpush1.bf16.msra.mxu0 %v1708_v8  ;;  %1018 = vmatprep.mubr.bf16.mxu0 %v548_v35 }
 0x122   :  { %988 = vmatprep.subr.bf16.mxu0 %v1713_v10 }
 0x125   :  { %989 = vmatpush1.bf16.msra.mxu0 %v1711_v11 }
 0x126   :  { %990 = vmatprep.subr.bf16.mxu0 %v1716_v12 }
 0x129   :  { %991 = vmatpush1.bf16.msra.mxu0 %v1714_v14 }
 0x12a   :  { %992 = vmatprep.subr.bf16.mxu0 %v1719_v15  ;;  %v1776_v15 = vld [vmem:[%s2362_s9 + $0x20] sm:$0xff]  }
 0x12d   :  { %993 = vmatpush1.bf16.msra.mxu0 %v1717_v19  ;;  %v1322_v19 = vld [vmem:[%s2364_s2] sm:$0xff]  ;;  %s1785_s2 = smov 112  }
 0x12e   :  { %994 = vmatprep.subr.bf16.mxu0 %v1722_v20  ;;  %1324 = vrot.lane.b32.xlu0 %v1322_v19, %s1784_s0 }
 0x131   :  { %995 = vmatpush1.bf16.msra.mxu0 %v1720_v27 }
 0x132   :  { %996 = vmatprep.subr.bf16.mxu0 %v1725_v30 }
 0x135   :  { %997 = vmatpush1.bf16.msra.mxu0 %v1723_v33 }
 0x136   :  { %998 = vmatprep.subr.bf16.mxu0 %v1728_v34 }
 0x139   :  { %999 = vmatpush1.bf16.msra.mxu0 %v1726_v36 }
 0x13a   :  { %1000 = vmatprep.subr.bf16.mxu0 %v1731_v37 }
 0x13d   :  { %1001 = vmatpush1.bf16.msra.mxu0 %v1729_v39 }
 0x13e   :  { %1002 = vmatprep.subr.bf16.mxu0 %v1734_v40 }
 0x141   :  { %1003 = vmatpush1.bf16.msra.mxu0 %v1732_v41 }
 0x142   :  { %1004 = vmatprep.subr.bf16.mxu0 %v1737_v42 }
 0x145   :  { %1005 = vmatpush1.bf16.msra.mxu0 %v1735_v43 }
 0x146   :  { %1006 = vmatprep.subr.bf16.mxu0 %v1740_v44 }
 0x149   :  { %1007 = vmatpush1.bf16.msra.mxu0 %v1738_v45 }
 0x14a   :  { %1008 = vmatprep.subr.bf16.mxu0 %v1743_v46 }
 0x14d   :  { %1009 = vmatpush1.bf16.msra.mxu0 %v1741_v47 }
 0x14e   :  { %1010 = vmatprep.subr.bf16.mxu0 %v1746_v48 }
 0x151   :  { %1011 = vmatpush1.bf16.msra.mxu0 %v1744_v49 }
 0x152   :  { %1012 = vmatprep.subr.bf16.mxu0 %v1749_v50 }
 0x155   :  { %1013 = vmatpush1.bf16.msra.mxu0 %v1747_v51 }
 0x156   :  { %1014 = vmatprep.subr.bf16.mxu0 %v1752_v52 }
 0x159   :  { %1015 = vmatpush1.bf16.msra.mxu0 %v1750_v53 }
 0x15a   :  { %1016 = vmatprep.subr.bf16.mxu0 %v1755_v54 }
 0x15d   :  { %1017 = vmatpush1.bf16.msra.mxu0 %v1753_v57 }
 0x160   :  { %1019 = vmatmul.mubr.bf16.vlgmr.msra.gmra.mrb[4].mxu0 %v547_v59 }
 0x1a0   :  { %v1325_v37 = vpop.permute.xlu0 %1324 }
 0x233   :  { %v1020_v4 = vpop.f32.mrb[4].mxu0 }
 0x234   :  { %v1553_v5 = vadd.f32 %v1020_v4, %v618_v2  ;;  %v1022_v6 = vpop.f32.mrb[5].mxu0 }
 0x235   :  { %v1554_v7 = vadd.f32 %v1022_v6, %v622_v3  ;;  %v1024_v8 = vpop.f32.mrb[6].mxu0 }
 0x236   :  { %v1027_v9 = vmax.f32 %v1553_v5, 0.0  ;;  %v1025_v10 = vpop.f32.mrb[7].mxu0 }
 0x237   :  { %v1028_v11 = vmax.f32 %v1554_v7, 0.0 }
 0x238   :  { %v1029_v14 = vpack.c.bf16 %v1027_v9, %v1027_v9 }
 0x239   :  { %v1030_v12 = vpack.c.bf16 %v1028_v11, %v1028_v11 }
 0x23b   :  { %1198 = vmatprep.mubr.bf16.mxu1 %v1030_v12 }
 0x23c   :  { %1199 = vmatmul.mubr.bf16.vlgmr.msra.gmra.mrb[4].mxu1 %v1029_v14 }
 0x23d   :  { %1534 = vmatpush3.bf16.msra.mxu1 %v1772_v13  ;;  %1549 = vmatprep.mubr.msk.bf16.mxu1 %vm1783_vm0, %v1782_v0 }
 0x23e   :  { %1535 = vmatprep.subr.bf16.mxu1 %v1782_v0 }
 0x241   :  { %1536 = vmatpush3.bf16.msra.mxu1 %v1773_v38 }
 0x242   :  { %1537 = vmatprep.subr.bf16.mxu1 %v1782_v0 }
 0x245   :  { %1538 = vmatpush3.bf16.msra.mxu1 %v1774_v55 }
 0x246   :  { %1539 = vmatprep.subr.bf16.mxu1 %v1782_v0 }
 0x249   :  { %1540 = vmatpush3.bf16.msra.mxu1 %v1775_v56 }
 0x24a   :  { %1541 = vmatprep.subr.bf16.mxu1 %v1782_v0 }
 0x24d   :  { %1542 = vmatpush3.bf16.msra.mxu1 %v1776_v15 }
 0x24e   :  { %1543 = vmatprep.subr.bf16.mxu1 %v1782_v0 }
 0x251   :  { %1544 = vmatpush3.bf16.msra.mxu1 %v1777_v16 }
 0x252   :  { %1545 = vmatprep.subr.bf16.mxu1 %v1782_v0 }
 0x255   :  { %1546 = vmatpush3.bf16.msra.mxu1 %v1778_v17 }
 0x256   :  { %1547 = vmatprep.subr.bf16.mxu1 %v1782_v0 }
 0x259   :  { %1548 = vmatpush3.bf16.msra.mxu1 %v1779_v18 }
 0x30f   :  { %v1518_v20 = vpop.f32.mrb[4].mxu1 }
 0x310   :  { %v1519_v22 = vpop.f32.mrb[5].mxu1 }
 0x311   :  { %v1520_v23 = vadd.f32 %v1519_v22, %v1518_v20  ;;  %v1521_v24 = vpop.f32.mrb[6].mxu1 }
 0x312   :  { %v1522_v25 = vpop.f32.mrb[7].mxu1 }
 0x313   :  { %v1201_v26 = vadd.f32 %v1520_v23, %v1476_v21 }
 0x315   :  { %v1206_v27 = vmax.f32 %v1201_v26, 0.0 }
 0x317   :  { %v1207_v28 = vpack.c.bf16 %v1206_v27, %v1206_v27 }
 0x319   :  { %1550 = vmatmul.mubr.bf16.vlgmr.msra.gmra.mrb[8].mxu1 %v1207_v28 }
 0x3ec   :  { %v1313_v30 = vpop.f32.mrb[8].mxu1 }
 0x3ed   :  { %v1314_v31 = vadd.f32 %v1493_v29, %v1313_v30  ;;  %v1551_v32 = vpop.f32.mrb[9].mxu1 }
 0x3ee   :  { %v1316_v33 = vpop.f32.mrb[10].mxu1 }
 0x3ef   :  { %v1319_v34 = vmul.f32 0.5, %v1314_v31  ;;  %v1552_v35 = vpop.f32.mrb[11].mxu1 }
 0x3f1   :  { %v1320_v36 = vmul.f32 1.442695, %v1319_v34 }
 0x3f3   :  { %1780 = vpow2.f32 %v1320_v36 }
 0x3fd   :  { %v1781_v39 = vpop.eup %1780 }
 0x3fe   :  { %v1327_v40 = vmul.f32 %v1781_v39, %v1325_v37  ;;  %v1338_v43 = vsel %vm1337_vm1, %v1314_v31, %v1781_v39 }
 0x400   :  { %1329 = vrot.lane.b32.xlu0 %v1327_v40, %s1785_s2 }
 0x472   :  { %v1330_v41 = vpop.permute.xlu0 %1329 }
 0x473   :  { %v1332_v42 = vadd.f32 %v1330_v41, %v1314_v31 }
 0x475   :  { %1334 = vrot.lane.b32.xlu1 %v1332_v42, %s1786_s8 }
 0x4e7   :  { %v1335_v44 = vpop.permute.xlu1 %1334 }
 0x4e8   :  { %v1340_v45 = vsel %vm1339_vm2, %v1338_v43, %v1335_v44 }
 0x4e9   :  { %v1342_v46 = vsel %vm1341_vm3, %v1340_v45, 0.0 }
 0x4ea   :  { %1343 = vst [vmem:[%s2367_s11] sm:$0xff] %v1342_v46 }

</bundles_post_ra>
